<compile_context>
chip_gen: v7x
topology: tpu7x:2x2x1
jax: 0.10.0
libtpu: 0.0.40
codegen_flags: <defaults>
</compile_context>

<pallas_src>
import jax
import jax.numpy as jnp
from jax.experimental import pallas as pl
from jax.experimental.pallas import tpu as pltpu


def memory_kernel(kn_ref, vt_ref, x_ref, o_ref):
    # kn_ref: (L, C)   pre-normalized keys (or values) -- grid-invariant/resident
    # vt_ref: (C, L)   raw values, transposed          -- grid-invariant/resident
    # x_ref : (1, C, T) tile of x in native (b, c, N) layout
    # o_ref : (1, C, T)
    eps = jnp.float32(1e-12)  # matches F.normalize default eps

    x = x_ref[0].astype(jnp.float32)      # (C, T)
    kn = kn_ref[...]                      # (L, C), f32 (pre-cast in wrapper)
    vt = vt_ref[...]                      # (C, L), f32

    # cosine similarity: norm_keys @ norm_x.  The per-column x-norm scale is
    # applied to `cos` (L x T mults) instead of to x (C x T) -- identical math.
    cos = jnp.dot(kn, x, preferred_element_type=jnp.float32)      # (L, T)
    sumsq = jnp.sum(x * x, axis=0, keepdims=True)                 # (1, T)
    cos = cos * jax.lax.rsqrt(jnp.maximum(sumsq, eps * eps))      # (L, T)

    # softmax over the memory-slot axis L (torch Softmax(dim=1) on (b, L, N)).
    m = jnp.max(cos, axis=0, keepdims=True)
    e = jnp.exp(cos - m)
    denom = jnp.sum(e, axis=0, keepdims=True)
    sim = e * pl.reciprocal(denom, approx=True)                   # (L, T)

    # value readout: (C, L) @ (L, T) -> (C, T), already the output layout.
    out = jnp.dot(vt, sim, preferred_element_type=jnp.float32)
    o_ref[0] = out.astype(o_ref.dtype)


def _choose_n_tile(N: int, b: int, max_tile: int = 2048) -> int:
    """Largest multiple of 128 <= max_tile that divides N; full N otherwise."""
    if N % 128 != 0:
        return N  # block equal to full array dim is always legal
    t = (min(N, max_tile) // 128) * 128
    while N % t != 0:
        t -= 128
    # Keep >= 2 total grid steps when possible so v7x's 2 TCs both get work.
    if b * (N // t) < 2 and t % 256 == 0 and N % (t // 2) == 0:
        t //= 2
    return t


def memory_module_forward(x, keys, values, normality=False, max_n_tile=2048):
    """x: (b, c, h, w) NCHW; keys/values: (L, c). Returns (b, c, h, w)."""
    b, c, h, w = x.shape
    N = h * w
    L = keys.shape[0]
    eps = jnp.float32(1e-12)

    # Hoist the grid-invariant key/value normalization out of the kernel
    # (pre-cast to the matmul dtype so the kernel does no per-step astype).
    src = (values if normality else keys).astype(jnp.float32)
    inv_norm = jax.lax.rsqrt(
        jnp.maximum(jnp.sum(src * src, axis=-1, keepdims=True), eps * eps)
    )
    kn = src * inv_norm                                    # (L, c)
    vt = jnp.transpose(values.astype(jnp.float32))         # (c, L), tiny

    # Native layout: only a free reshape, no transposes, no padding copies.
    x3 = x.reshape(b, c, N)

    T = _choose_n_tile(N, b, max_n_tile)
    grid = (b, N // T)

    out3 = pl.pallas_call(
        memory_kernel,
        out_shape=jax.ShapeDtypeStruct((b, c, N), x.dtype),
        grid=grid,
        in_specs=[
            pl.BlockSpec((L, c), lambda bi, ni: (0, 0)),       # normalized keys (resident)
            pl.BlockSpec((c, L), lambda bi, ni: (0, 0)),       # values^T (resident)
            pl.BlockSpec((1, c, T), lambda bi, ni: (bi, 0, ni)),  # x tile
        ],
        out_specs=pl.BlockSpec((1, c, T), lambda bi, ni: (bi, 0, ni)),
        compiler_params=pltpu.CompilerParams(
            dimension_semantics=("parallel", "parallel"),      # megacore-friendly
        ),
    )(kn, vt, x3)

    return out3.reshape(b, c, h, w)


def reference_forward(x, keys, values, normality=False):
    b, c, h, w = x.shape
    xs = jnp.transpose(x.reshape(b, c, -1), (0, 2, 1))  # (b, N, c)
    src = values if normality else keys
    eps = 1e-12
    kn = src / jnp.maximum(jnp.linalg.norm(src, axis=-1, keepdims=True), eps)
    xn = xs / jnp.maximum(jnp.linalg.norm(xs, axis=-1, keepdims=True), eps)
    cos = jnp.einsum("lc,bnc->bln", kn, xn)              # (b, L, N)
    sim = jax.nn.softmax(cos, axis=1)                    # softmax over L
    fn = jnp.einsum("bln,lc->bnc", sim, values)          # (b, N, c)
    return jnp.transpose(fn, (0, 2, 1)).reshape(b, c, h, w)


if __name__ == "__main__":
    # Small shapes consistent with the module defaults (channel=128, L=50).
    B, C, H, W = 2, 128, 16, 16
    L = 50

    key = jax.random.PRNGKey(0)
    k_keys, k_vals, k_x = jax.random.split(key, 3)
    keys = jax.random.normal(k_keys, (L, C), dtype=jnp.float32)    # self.keys
    values = jax.random.normal(k_vals, (L, C), dtype=jnp.float32)  # self.values
    x = jax.random.normal(k_x, (B, C, H, W), dtype=jnp.float32)

    out = jax.block_until_ready(memory_module_forward(x, keys, values, normality=False))
    ref = reference_forward(x, keys, values, normality=False)
    assert out.shape == (B, C, H, W)
    # approx EUP reciprocal in softmax + default MXU precision -> 1e-2 tolerance.
    assert jnp.allclose(out, ref, rtol=1e-2, atol=1e-2)

    # normality=True branch.
    out_n = jax.block_until_ready(
        memory_module_forward(x, keys, values, normality=True)
    )
    ref_n = reference_forward(x, keys, values, normality=True)
    assert jnp.allclose(out_n, ref_n, rtol=1e-2, atol=1e-2)

    print("KERNEL_OK")
</pallas_src>

<mosaic_0001>
module attributes {stable_mosaic.version = 11 : i64} {
  func.func @memory_kernel(%arg0: i32, %arg1: i32, %arg2: memref<50x128xf32, #tpu.memory_space<vmem>>, %arg3: memref<128x50xf32, #tpu.memory_space<vmem>>, %arg4: memref<1x128x256xf32, #tpu.memory_space<vmem>>, %arg5: memref<1x128x256xf32, #tpu.memory_space<vmem>>) attributes {dimension_semantics = [#tpu.dimension_semantics<parallel>, #tpu.dimension_semantics<parallel>], iteration_bounds = array<i64: 2, 1>, scalar_prefetch = 0 : i64, scratch_operands = 0 : i64, tpu.core_type = #tpu.core_type<tc>, window_params = [{pipeline_mode = #tpu.pipeline_mode<synchronous>, transform_indices = @transform_0, window_bounds = array<i64: 50, 128>}, {pipeline_mode = #tpu.pipeline_mode<synchronous>, transform_indices = @transform_1, window_bounds = array<i64: 128, 50>}, {transform_indices = @transform_2, window_bounds = array<i64: 1, 128, 256>}, {transform_indices = @transform_3, window_bounds = array<i64: 1, 128, 256>}]} {
    %c0 = arith.constant 0 : index
    %c0_0 = arith.constant 0 : index
    %c0_1 = arith.constant 0 : index
    %0 = vector.load %arg4[%c0, %c0_0, %c0_1] : memref<1x128x256xf32, #tpu.memory_space<vmem>>, vector<1x128x256xf32>
    %1 = vector.shape_cast %0 : vector<1x128x256xf32> to vector<128x256xf32>
    %c0_2 = arith.constant 0 : index
    %c0_3 = arith.constant 0 : index
    %2 = vector.load %arg2[%c0_2, %c0_3] : memref<50x128xf32, #tpu.memory_space<vmem>>, vector<50x128xf32>
    %c0_4 = arith.constant 0 : index
    %c0_5 = arith.constant 0 : index
    %3 = vector.load %arg3[%c0_4, %c0_5] : memref<128x50xf32, #tpu.memory_space<vmem>>, vector<128x50xf32>
    %cst = arith.constant dense<0.000000e+00> : vector<50x256xf32>
    %4 = tpu.matmul %2, %1, %cst {dimension_numbers = #tpu.dot_dimension_numbers<[1], [0], [0], [1], [0, 0, 1, 1], [], []>} : vector<50x128xf32>, vector<128x256xf32>, vector<50x256xf32> -> vector<50x256xf32>
    %5 = arith.mulf %1, %1 : vector<128x256xf32>
    %cst_6 = arith.constant dense<0.000000e+00> : vector<256xf32>
    %6 = vector.multi_reduction <add>, %5, %cst_6 [0] : vector<128x256xf32> to vector<256xf32>
    %7 = vector.shape_cast %6 : vector<256xf32> to vector<1x256xf32>
    %cst_7 = arith.constant 9.99999996E-13 : f32
    %cst_8 = arith.constant 9.99999996E-13 : f32
    %8 = arith.mulf %cst_7, %cst_8 : f32
    %9 = vector.broadcast %8 : f32 to vector<1x256xf32>
    %10 = arith.maximumf %7, %9 : vector<1x256xf32>
    %11 = math.rsqrt %10 : vector<1x256xf32>
    %12 = vector.broadcast %11 : vector<1x256xf32> to vector<50x256xf32>
    %13 = arith.mulf %4, %12 : vector<50x256xf32>
    %cst_9 = arith.constant dense<0xFF800000> : vector<256xf32>
    %14 = vector.multi_reduction <maximumf>, %13, %cst_9 [0] : vector<50x256xf32> to vector<256xf32>
    %15 = vector.shape_cast %14 : vector<256xf32> to vector<1x256xf32>
    %16 = vector.broadcast %15 : vector<1x256xf32> to vector<50x256xf32>
    %17 = arith.subf %13, %16 : vector<50x256xf32>
    %18 = math.exp %17 : vector<50x256xf32>
    %cst_10 = arith.constant dense<0.000000e+00> : vector<256xf32>
    %19 = vector.multi_reduction <add>, %18, %cst_10 [0] : vector<50x256xf32> to vector<256xf32>
    %20 = vector.shape_cast %19 : vector<256xf32> to vector<1x256xf32>
    %21 = tpu.reciprocal %20 {approx = true} : vector<1x256xf32> -> vector<1x256xf32>
    %22 = vector.broadcast %21 : vector<1x256xf32> to vector<50x256xf32>
    %23 = arith.mulf %18, %22 : vector<50x256xf32>
    %cst_11 = arith.constant dense<0.000000e+00> : vector<128x256xf32>
    %24 = tpu.matmul %3, %23, %cst_11 {dimension_numbers = #tpu.dot_dimension_numbers<[1], [0], [0], [1], [0, 0, 1, 1], [], []>} : vector<128x50xf32>, vector<50x256xf32>, vector<128x256xf32> -> vector<128x256xf32>
    %c0_12 = arith.constant 0 : index
    %c0_13 = arith.constant 0 : index
    %c0_14 = arith.constant 0 : index
    %25 = vector.load %arg5[%c0_12, %c0_13, %c0_14] : memref<1x128x256xf32, #tpu.memory_space<vmem>>, vector<1x128x256xf32>
    %26 = vector.shape_cast %25 : vector<1x128x256xf32> to vector<128x256xf32>
    %27 = vector.shape_cast %24 : vector<128x256xf32> to vector<1x128x256xf32>
    tpu.vector_store %arg5[%c0_12, %c0_13, %c0_14], %27 {strides = array<i32>} : memref<1x128x256xf32, #tpu.memory_space<vmem>>, vector<1x128x256xf32>,
    return
  }
  func.func @transform_0(%arg0: i32, %arg1: i32) -> (i32, i32) {
    %c0_i32 = arith.constant 0 : i32
    %c0_i32_0 = arith.constant 0 : i32
    %c0_i32_1 = arith.constant 0 : i32
    return %c0_i32, %c0_i32_0 : i32, i32
  }
  func.func @transform_1(%arg0: i32, %arg1: i32) -> (i32, i32) {
    %c0_i32 = arith.constant 0 : i32
    %c0_i32_0 = arith.constant 0 : i32
    %c0_i32_1 = arith.constant 0 : i32
    return %c0_i32, %c0_i32_0 : i32, i32
  }
  func.func @transform_2(%arg0: i32, %arg1: i32) -> (i32, i32, i32) {
    %c0_i32 = arith.constant 0 : i32
    %c0_i32_0 = arith.constant 0 : i32
    return %arg0, %c0_i32, %arg1 : i32, i32, i32
  }
  func.func @transform_3(%arg0: i32, %arg1: i32) -> (i32, i32, i32) {
    %c0_i32 = arith.constant 0 : i32
    %c0_i32_0 = arith.constant 0 : i32
    return %arg0, %c0_i32, %arg1 : i32, i32, i32
  }
}

</mosaic_0001>

<bundles_post_ra>
// kernel: tpu_custom_call.1
= control target key start
LH: loop header
LB: loop body
LE: loop exit
PB: predicated region body
PF: predicated region fallthrough
CT: control target
= control target key end

     0   :  { %8 = vsyncpa [#allocation3], 0  ;;  %s1644_s0 = inlined_call_operand.vmem [shape: f32[50,128], index: 0, kind: input, shape index: {}]   ;;  %s1645_s1 = inlined_call_operand.vmem [shape: f32[128,50], index: 1, kind: input, shape index: {}]   ;;  %s1646_s2 = inlined_call_operand.hbm [shape: f32[2,128,256], index: 2, kind: input, shape index: {}]   ;;  %s1647_s3 = inlined_call_operand.hbm [shape: f32[2,128,256], index: 3, kind: output, shape index: {}]  }
   0x1   :  { %10 = vsyncpa [#allocation3 + $0x1], 0 }
   0x2   :  { %11 = vsyncpa [#allocation4], 0 }
   0x3   :  { %13 = vsyncpa [#allocation4 + $0x1], 0  ;;  %s1256_s12 = smov 0   ;;  %s1258_s13 = smov 0  }
   0x4   :  { %s1260_s14 = smov 0   ;;  %s1262_s15 = smov 0  }
   0x5   :  { %s1264_s16 = smov 0   ;;  %s1266_s17 = smov 0  }
   0x6 LB: > { %s925_s18 = sadd.s32 4294967295, %s1227_s17   ;;  %s926_s19 = sadd.s32 4294967294, %s1227_s17   ;;  %s1227_s17 = sphi %s1266_s17, %s19_s17   ;;  %s1223_s16 = sphi %s1264_s16, %s1662_s16   ;;  %s1219_s15 = sphi %s1262_s15, %s1661_s15   ;;  %s1215_s14 = sphi %s1260_s14, %s1660_s14   ;;  %s1211_s13 = sphi %s1258_s13, %s1659_s13   ;;  %s1207_s12 = sphi %s1256_s12, %s1658_s12  }
   0x7   : > { %s31_s20 = sadd.s32 1, %s1223_s16  ;;  %s82_s21 = sadd.s32 1, %s1215_s14 }
   0x8   : > { %p33_p0 = scmp.ge.s32.totalorder %s31_s20, 2  ;;  %p89_p1 = scmp.ne.s32.totalorder %s1215_s14, %s1211_s13 }
   0x9   : > { %p90_p2 = scmp.eq.s32.totalorder %s1227_s17, 0  ;;  %p95_p3 = scmp.ne.s32.totalorder %s1211_s13, %s1207_s12 }
   0xa   : > { %s1664_s20 = smov (%p33_p0, %s31_s20), 0  ;;  %p96_p5 = scmp.eq.s32.totalorder %s925_s18, 0 }
   0xb   : > { %p1297_p4 = por %p90_p2, %p89_p1  ;;  %s77_s23 = ssub.s32 %s1223_s16, %s1664_s20 }
   0xc   : > { %p121_p6 = scmp.eq.s32.totalorder %s925_s18, 1  ;;  %p80_p7 = scmp.eq.s32.totalorder %s77_s23, 0 }
   0xd   : > { %p1303_p8 = por %p96_p5, %p95_p3  ;;  %p127_p10 = scmp.eq.s32.totalorder %s926_s19, 1 }
   0xe   : > { %p1307_p9 = por %p121_p6, %p89_p1  ;;  %p1024_p13 = scmp.lt.s32.totalorder %s1227_s17, 2 }
   0xf   : > { %s1312_s26 = scalar_select %p80_p7, %s1215_s14, %s82_s21  }
  0x10   : > { %s1651_s25 = scalar_select %p1307_p9, 1, 0 }
  0x11   : > { %p1314_p11 = por %p127_p10, %p95_p3  ;;  %s153_s28 = sand.u32 1, %s1215_s14  }
  0x12   : > { %s929_s29 = sshll.u32 %s153_s28, 8  ;;  %s958_s30 = sshll.u32 %s1223_s16, 12 }
  0x13   : > { %s1652_s27 = scalar_select %p1314_p11, 1, 0 }
  0x14   : > { %s1325_s6 = scalar_lea.hbm %s1646_s2, %s958_s30  ;;  %s157_s7 = scalar_lea.vmem [#allocation2], %s929_s29 }
  0x15   : > { %s166_s8 = sshll.u32 %s157_s7, 4  ;;  %p1331_p0 = pnand %p1024_p13, %p1297_p4  ;;  %s1327_s8 = int_to_ptr.vmem [resolvable:$true] %s166_s8 }
  0x16   : > { %s1336_s10 = scalar_lea.sflag [#allocation3], %s153_s28  ;;  %s1115_s11 = scalar_lea.hbm %s1325_s6, 4096 }
  0x17   : > { %p1116_p2 = scmp.ne.s32.totalorder %s1325_s6, %s1115_s11  ;;  %p1117_p3 = pneg %p1331_p0 }
  0x18   : > { %s1120_s21 = scalar_lea.hbm %s1646_s2, 8192  ;;  %p1121_p4 = scmp.lt.u32.totalorder %s1325_s6, %s1646_s2 }
  0x19   : > { %p1118_p5 = pnand %p1117_p3, %p1116_p2  ;;  %p1122_p7 = scmp.lt.u32.totalorder %s1120_s21, %s1115_s11 }
  0x1a   : > { %p1124_p13 = scmp.lt.u32.totalorder %s1115_s11, %s1325_s6 }
  0x1b   : > { %p1119_p6 = pneg %p1118_p5  ;;  %p1123_p10 = por %p1122_p7, %p1121_p4 }
  0x1d   : > { %p1125_p12 = por %p1124_p13, %p1123_p10 }
  0x1f   : > { %p1126_p1 = pnand %p1125_p12, %p1119_p6 }
  0x21   : > { %1129 = shalt.err (!%p1126_p1)
}
  0x22   : > { %s1130_s28 = scalar_lea.vmem %s1327_s8, 4096  ;;  %s1229_s29 = smov [#allocation2]  }
  0x23   : > { %p1131_p2 = scmp.ne.s32.totalorder %s1327_s8, %s1130_s28  ;;  %s1135_s30 = sshll.u32 %s1229_s29, 4  ;;  %s1136_s30 = int_to_ptr.vmem [resolvable:$false] %s1135_s30 }
  0x24   : > { %s1137_s4 = scalar_lea.vmem %s1136_s30, 8192  ;;  %p1138_p9 = scmp.lt.s32.totalorder %s1327_s8, %s1136_s30 }
  0x25   : > { %p1133_p5 = pnand %p1131_p2, %p1117_p3  ;;  %p1139_p4 = scmp.lt.s32.totalorder %s1137_s4, %s1130_s28 }
  0x27   : > { %p1134_p11 = pneg %p1133_p5  ;;  %p1140_p7 = por %p1139_p4, %p1138_p9 }
  0x29   : > { %p1141_p10 = pnand %p1140_p7, %p1134_p11 }
  0x2b   : > { %1144 = shalt.err (!%p1141_p10)
}
  0x2c   : > { %s1230_s5 = smov 256   ;;  %s1231_s7 = smov 16  }
  0x2d   : > { %1019 = dma.hbm_to_vmem [thread:$0]  (!%p1331_p0), %s1325_s6, 4096, %s1327_s8, %s1336_s10, %s1230_s5, %s1230_s5, %s1231_s7  }
  0x2e   : > { %p174_p12 = scmp.lt.s32.totalorder %s1227_s17, 3  ;;  %p1654_p1 = scmp.ge.s32.totalorder %s1227_s17, 1 }
  0x30   : > { %p175_p3 = pnand %p1654_p1, %p174_p12 }
  0x31   : > { %s1368_s11 = sand.u32 (!%p175_p3), 1, %s1211_s13  }
  0x32   : > { %178 = sbr.rel (%p175_p3) target bundleno = 703 (0x2bf), region = 32  ;;  %s933_s18 = sshll.u32 (!%p175_p3), %s1368_s11, 8 }
  0x33   : > { %s181_s19 = scalar_lea.sflag (!%p175_p3), [#allocation3], %s1368_s11  ;;  %s1374_s21 = scalar_lea.vmem (!%p175_p3), [#allocation2], %s933_s18 }
  0x39   : > { %1198 = dma.done.wait (%p1303_p8), %s181_s19, 4096  }
  0x3a   : > { %1200 = vsyncadd (%p1303_p8), %s181_s19, 4294963200  ;;  %v1232_v0 = vmov 0.0   ;;  %v210_v1 = vld [vmem:[%s1374_s21 + $0x8] sm:$0xff]  ;;  %v212_v2 = vld [vmem:[%s1374_s21 + $0x18] sm:$0xff]  ;;  %vm467_vm0 = vcmask 1041408   ;;  %vm574_vm1 = vcmask 408576  }
  0x3b   : > { %328 = vmatprep.mubr.f32.mxu0 %v1232_v0  ;;  %705 = vmatprep.mubr.f32.mxu1 %v1232_v0  ;;  %v209_v3 = vld [vmem:[%s1374_s21] sm:$0xff]  ;;  %v960_v4 = vpack.c.bf16 %v212_v2, %v210_v1  ;;  %v372_v5 = vmul.f32 %v210_v1, %v210_v1  ;;  %v374_v6 = vmul.f32 %v212_v2, %v212_v2  ;;  %v211_v7 = vld [vmem:[%s1374_s21 + $0x10] sm:$0xff]  ;;  %v214_v9 = vld [vmem:[%s1374_s21 + $0x28] sm:$0xff]  ;;  %s1554_s6 = scalar_lea.vmem [#allocation5], %s933_s18  ;;  %s959_s18 = sshll.u32 %s1219_s15, 12 }
  0x3c   : > { %v371_v8 = vmul.f32 %v209_v3, %v209_v3  ;;  %v216_v10 = vld [vmem:[%s1374_s21 + $0x38] sm:$0xff]  ;;  %v962_v11 = vpack.c.bf16 %v211_v7, %v209_v3  ;;  %v373_v12 = vmul.f32 %v211_v7, %v211_v7  ;;  %v376_v14 = vmul.f32 %v214_v9, %v214_v9  ;;  %v213_v15 = vld [vmem:[%s1374_s21 + $0x20] sm:$0xff]  ;;  %v215_v16 = vld [vmem:[%s1374_s21 + $0x30] sm:$0xff]  ;;  %s838_s8 = sshll.u32 %s1554_s6, 4  ;;  %s1591_s22 = scalar_lea.hbm %s1647_s3, %s959_s18  ;;  %s1593_s8 = int_to_ptr.vmem [resolvable:$true] %s838_s8 }
  0x3d   : > { %v964_v13 = vpack.c.bf16 %v216_v10, %v214_v9  ;;  %v218_v17 = vld [vmem:[%s1374_s21 + $0x48] sm:$0xff]  ;;  %961 = vmatprep.subr.bf16.mxu0 %v960_v4  ;;  %v424_v18 = vadd.f32 %v374_v6, %v372_v5  ;;  %v378_v19 = vmul.f32 %v216_v10, %v216_v10  ;;  %v375_v20 = vmul.f32 %v213_v15, %v213_v15  ;;  %v220_v21 = vld [vmem:[%s1374_s21 + $0x58] sm:$0xff]  ;;  %v217_v28 = vld [vmem:[%s1374_s21 + $0x40] sm:$0xff]  ;;  %s823_s23 = scalar_lea.sflag [#allocation4], %s1368_s11  ;;  %s1145_s15 = scalar_lea.vmem %s1593_s8, 4096 }
  0x3e   : > { %963 = vmatpush1.bf16.msra.mxu0 %v962_v11  ;;  %v403_v22 = vadd.f32 %v373_v12, %v371_v8  ;;  %v966_v23 = vpack.c.bf16 %v215_v16, %v213_v15  ;;  %v377_v24 = vmul.f32 %v215_v16, %v215_v16  ;;  %v968_v26 = vpack.c.bf16 %v220_v21, %v218_v17  ;;  %v219_v29 = vld [vmem:[%s1374_s21 + $0x50] sm:$0xff]  ;;  %v222_v32 = vld [vmem:[%s1374_s21 + $0x68] sm:$0xff]  ;;  %v224_v33 = vld [vmem:[%s1374_s21 + $0x78] sm:$0xff]  ;;  %p1146_p8 = scmp.ne.s32.totalorder %s1593_s8, %s1145_s15  ;;  %p1655_p9 = scmp.ne.s32.totalorder %s1651_s25, 0 }
  0x3f   : > { %965 = vmatprep.subr.bf16.mxu0 %v964_v13  ;;  %v425_v25 = vadd.f32 %v424_v18, %v376_v14  ;;  %v380_v27 = vmul.f32 %v218_v17, %v218_v17  ;;  %v379_v31 = vmul.f32 %v217_v28, %v217_v28  ;;  %v382_v35 = vmul.f32 %v220_v21, %v220_v21  ;;  %v221_v42 = vld [vmem:[%s1374_s21 + $0x60] sm:$0xff]  ;;  %v223_v43 = vld [vmem:[%s1374_s21 + $0x70] sm:$0xff]  ;;  %v226_v46 = vld [vmem:[%s1374_s21 + $0x88] sm:$0xff]  ;;  %s1233_s28 = smov [#allocation5]  }
  0x40   : > { %v404_v30 = vadd.f32 %v403_v22, %v375_v20  ;;  %v970_v37 = vpack.c.bf16 %v219_v29, %v217_v28  ;;  %v381_v38 = vmul.f32 %v219_v29, %v219_v29  ;;  %v972_v40 = vpack.c.bf16 %v224_v33, %v222_v32  ;;  %v228_v47 = vld [vmem:[%s1374_s21 + $0x98] sm:$0xff]  ;;  %v225_v56 = vld [vmem:[%s1374_s21 + $0x80] sm:$0xff]  ;;  %v227_v57 = vld [vmem:[%s1374_s21 + $0x90] sm:$0xff]  ;;  %p1147_p11 = pnand %p1146_p8, %p1655_p9  ;;  %s1149_s29 = sshll.u32 %s1233_s28, 4  ;;  %s1150_s29 = int_to_ptr.vmem [resolvable:$false] %s1149_s29 }
  0x41   : > { %v426_v34 = vadd.f32 %v425_v25, %v378_v19  ;;  %v384_v41 = vmul.f32 %v222_v32, %v222_v32  ;;  %v383_v45 = vmul.f32 %v221_v42, %v221_v42  ;;  %v386_v49 = vmul.f32 %v224_v33, %v224_v33  ;;  %v230_v60 = vld [vmem:[%s1374_s21 + $0xa8] sm:$0xff]  ;;  %v232_v61 = vld [vmem:[%s1374_s21 + $0xb8] sm:$0xff]  ;;  %v229_v7 = vld [vmem:[%s1374_s21 + $0xa0] sm:$0xff]  ;;  %s1151_s30 = scalar_lea.vmem %s1150_s29, 8192  ;;  %p1152_p6 = scmp.lt.s32.totalorder %s1593_s8, %s1150_s29 }
  0x42   : > { %967 = vmatpush1.bf16.msra.mxu0 %v966_v23  ;;  %v405_v36 = vadd.f32 %v404_v30, %v377_v24  ;;  %v974_v51 = vpack.c.bf16 %v223_v43, %v221_v42  ;;  %v385_v52 = vmul.f32 %v223_v43, %v223_v43  ;;  %v976_v54 = vpack.c.bf16 %v228_v47, %v226_v46  ;;  %v231_v8 = vld [vmem:[%s1374_s21 + $0xb0] sm:$0xff]  ;;  %v234_v11 = vld [vmem:[%s1374_s21 + $0xc8] sm:$0xff]  ;;  %v236_v12 = vld [vmem:[%s1374_s21 + $0xd8] sm:$0xff]  ;;  %p1148_p0 = pneg %p1147_p11  ;;  %p1153_p13 = scmp.lt.s32.totalorder %s1151_s30, %s1145_s15 }
  0x43   : > { %969 = vmatprep.subr.bf16.mxu0 %v968_v26  ;;  %v427_v39 = vadd.f32 %v426_v34, %v380_v27  ;;  %v388_v55 = vmul.f32 %v226_v46, %v226_v46  ;;  %v387_v59 = vmul.f32 %v225_v56, %v225_v56  ;;  %v390_v63 = vmul.f32 %v228_v47, %v228_v47  ;;  %v233_v21 = vld [vmem:[%s1374_s21 + $0xc0] sm:$0xff]  ;;  %v235_v22 = vld [vmem:[%s1374_s21 + $0xd0] sm:$0xff]  ;;  %v238_v25 = vld [vmem:[%s1374_s21 + $0xe8] sm:$0xff] }
  0x44   : > { %v406_v44 = vadd.f32 %v405_v36, %v379_v31  ;;  %v978_v2 = vpack.c.bf16 %v227_v57, %v225_v56  ;;  %v389_v3 = vmul.f32 %v227_v57, %v227_v57  ;;  %v980_v5 = vpack.c.bf16 %v232_v61, %v230_v60  ;;  %v240_v26 = vld [vmem:[%s1374_s21 + $0xf8] sm:$0xff]  ;;  %v239_v36 = vld [vmem:[%s1374_s21 + $0xf0] sm:$0xff]  ;;  %p1154_p2 = por %p1153_p13, %p1152_p6 }
  0x45   : > { %v428_v48 = vadd.f32 %v427_v39, %v382_v35  ;;  %v392_v6 = vmul.f32 %v230_v60, %v230_v60  ;;  %v391_v10 = vmul.f32 %v229_v7, %v229_v7  ;;  %v394_v14 = vmul.f32 %v232_v61, %v232_v61  ;;  %v237_v35 = vld [vmem:[%s1374_s21 + $0xe0] sm:$0xff] }
  0x46   : > { %971 = vmatpush1.bf16.msra.mxu0 %v970_v37  ;;  %v407_v50 = vadd.f32 %v406_v44, %v381_v38  ;;  %v982_v16 = vpack.c.bf16 %v231_v8, %v229_v7  ;;  %v393_v17 = vmul.f32 %v231_v8, %v231_v8  ;;  %v984_v19 = vpack.c.bf16 %v236_v12, %v234_v11  ;;  %p1155_p5 = pnand %p1154_p2, %p1148_p0 }
  0x47   : > { %973 = vmatprep.subr.bf16.mxu0 %v972_v40  ;;  %v429_v53 = vadd.f32 %v428_v48, %v384_v41  ;;  %v396_v20 = vmul.f32 %v234_v11, %v234_v11  ;;  %v395_v24 = vmul.f32 %v233_v21, %v233_v21  ;;  %v398_v28 = vmul.f32 %v236_v12, %v236_v12  ;;  %v241_v48 = vld [vmem:[%s1644_s0] sm:$0xff] }
  0x48   : > { %v408_v58 = vadd.f32 %v407_v50, %v383_v45  ;;  %v986_v30 = vpack.c.bf16 %v235_v22, %v233_v21  ;;  %v397_v31 = vmul.f32 %v235_v22, %v235_v22  ;;  %v988_v33 = vpack.c.bf16 %v240_v26, %v238_v25  ;;  %v243_v50 = vld [vmem:[%s1644_s0 + $0x10] sm:$0xff] }
  0x49   : > { %v430_v62 = vadd.f32 %v429_v53, %v386_v49  ;;  %v400_v34 = vmul.f32 %v238_v25, %v238_v25  ;;  %v399_v38 = vmul.f32 %v237_v35, %v237_v35  ;;  %v402_v40 = vmul.f32 %v240_v26, %v240_v26  ;;  %v242_v49 = vld [vmem:[%s1644_s0 + $0x8] sm:$0xff] }
  0x4a   : > { %975 = vmatpush1.bf16.msra.mxu0 %v974_v51  ;;  %v409_v1 = vadd.f32 %v408_v58, %v385_v52  ;;  %v990_v42 = vpack.c.bf16 %v239_v36, %v237_v35  ;;  %v401_v43 = vmul.f32 %v239_v36, %v239_v36  ;;  %v244_v51 = vld [vmem:[%s1644_s0 + $0x18] sm:$0xff]  ;;  %v245_v52 = vld [vmem:[%s1644_s0 + $0x20] sm:$0xff]  ;;  %v246_v53 = vld [vmem:[%s1644_s0 + $0x28] sm:$0xff] }
  0x4b   : > { %977 = vmatprep.subr.bf16.mxu0 %v976_v54  ;;  %v431_v4 = vadd.f32 %v430_v62, %v388_v55  ;;  %v247_v54 = vld [vmem:[%s1644_s0 + $0x30] sm:$0x3] }
  0x4c   : > { %v410_v9 = vadd.f32 %v409_v1, %v387_v59 }
  0x4d   : > { %v432_v13 = vadd.f32 %v431_v4, %v390_v63 }
  0x4e   : > { %979 = vmatpush1.bf16.msra.mxu0 %v978_v2  ;;  %v411_v15 = vadd.f32 %v410_v9, %v389_v3 }
  0x4f   : > { %981 = vmatprep.subr.bf16.mxu0 %v980_v5  ;;  %v433_v18 = vadd.f32 %v432_v13, %v392_v6 }
  0x50   : > { %v412_v23 = vadd.f32 %v411_v15, %v391_v10 }
  0x51   : > { %v434_v27 = vadd.f32 %v433_v18, %v394_v14 }
  0x52   : > { %983 = vmatpush1.bf16.msra.mxu0 %v982_v16  ;;  %v413_v29 = vadd.f32 %v412_v23, %v393_v17 }
  0x53   : > { %985 = vmatprep.subr.bf16.mxu0 %v984_v19  ;;  %v435_v32 = vadd.f32 %v434_v27, %v396_v20 }
  0x54   : > { %v414_v37 = vadd.f32 %v413_v29, %v395_v24 }
  0x55   : > { %v436_v39 = vadd.f32 %v435_v32, %v398_v28 }
  0x56   : > { %987 = vmatpush1.bf16.msra.mxu0 %v986_v30  ;;  %v415_v41 = vadd.f32 %v414_v37, %v397_v31 }
  0x57   : > { %989 = vmatprep.subr.bf16.mxu0 %v988_v33  ;;  %v437_v44 = vadd.f32 %v436_v39, %v400_v34 }
  0x58   : > { %v416_v45 = vadd.f32 %v415_v41, %v399_v38 }
  0x59   : > { %v438_v46 = vadd.f32 %v437_v44, %v402_v40 }
  0x5a   : > { %991 = vmatpush1.bf16.msra.mxu0 %v990_v42  ;;  %v417_v47 = vadd.f32 %v416_v45, %v401_v43 }
  0x5b   : > { %v439_v56 = vrot.slane %v438_v46, 4 }
  0x5c   : > { %v418_v55 = vrot.slane %v417_v47, 4 }
  0x5d   : > { %329 = vmatmul.mubr.f32.vlgmr.msra.gmra.mrb[0].mxu0 %v241_v48  ;;  %v440_v58 = vadd.f32 %v439_v56, %v438_v46 }
  0x5e   : > { %334 = vmatprep.mubr.f32.mxu0 %v1232_v0  ;;  %v419_v57 = vadd.f32 %v418_v55, %v417_v47 }
  0x5f   : > { %v441_v60 = vrot.slane %v440_v58, 2 }
  0x60   : > { %v420_v59 = vrot.slane %v419_v57, 2 }
  0x61   : > { %335 = vmatmul.mubr.f32.gmra.mrb[2].mxu0 %v242_v49  ;;  %v442_v62 = vadd.f32 %v441_v60, %v440_v58 }
  0x62   : > { %340 = vmatprep.mubr.f32.mxu0 %v1232_v0  ;;  %v421_v61 = vadd.f32 %v420_v59, %v419_v57 }
  0x63   : > { %v443_v1 = vrot.slane %v442_v62, 1 }
  0x64   : > { %v422_v63 = vrot.slane %v421_v61, 1 }
  0x65   : > { %341 = vmatmul.mubr.f32.gmra.mrb[4].mxu0 %v243_v50  ;;  %v444_v3 = vadd.f32 %v443_v1, %v442_v62 }
  0x66   : > { %346 = vmatprep.mubr.f32.mxu0 %v1232_v0  ;;  %v423_v2 = vadd.f32 %v422_v63, %v421_v61 }
  0x67   : > { %v446_v5 = vmax.f32 %v444_v3, 1e-24 }
  0x68   : > { %v445_v4 = vmax.f32 %v423_v2, 1e-24 }
  0x69   : > { %347 = vmatmul.mubr.f32.gmra.mrb[6].mxu0 %v244_v51 }
  0x6a   : > { %352 = vmatprep.mubr.f32.mxu0 %v1232_v0  ;;  %1079 = vrsqrt.f32 %v445_v4 }
  0x6b   : > { %1081 = vrsqrt.f32 %v446_v5 }
  0x6d   : > { %353 = vmatmul.mubr.f32.gmra.mrb[8].mxu0 %v245_v52 }
  0x6e   : > { %358 = vmatprep.mubr.f32.mxu0 %v1232_v0 }
  0x71   : > { %359 = vmatmul.mubr.f32.gmra.mrb[10].mxu0 %v246_v53 }
  0x72   : > { %364 = vmatprep.mubr.f32.mxu0 %v1232_v0 }
  0x74   : > { %v1080_v6 = vpop.eup %1079 }
  0x75   : > { %365 = vmatmul.mubr.f32.gmra.mrb[12].mxu0 %v247_v54  ;;  %v1082_v7 = vpop.eup %1081 }
  0x76   : > { %693 = vmatprep.mubr.f32.mxu0 %v1232_v0 }
 0x130   : > { %v330_v8 = vpop.f32.mrb[0].mxu0 }
 0x131   : > { %v449_v9 = vmul.f32 %v1080_v6, %v330_v8  ;;  %v332_v10 = vpop.f32.mrb[1].mxu0 }
 0x132   : > { %v1442_v11 = vmul.f32 %v1082_v7, %v332_v10 }
 0x134   : > { %v336_v12 = vpop.f32.mrb[2].mxu0 }
 0x135   : > { %v451_v13 = vmul.f32 %v1080_v6, %v336_v12  ;;  %v338_v14 = vpop.f32.mrb[3].mxu0 }
 0x136   : > { %v1444_v15 = vmul.f32 %v1082_v7, %v338_v14 }
 0x138   : > { %v342_v16 = vpop.f32.mrb[4].mxu0 }
 0x139   : > { %v453_v17 = vmul.f32 %v1080_v6, %v342_v16  ;;  %v344_v18 = vpop.f32.mrb[5].mxu0 }
 0x13a   : > { %v1446_v19 = vmul.f32 %v1082_v7, %v344_v18 }
 0x13b   : > { %v463_v20 = vmax.f32 %v449_v9, %v453_v17 }
 0x13c   : > { %v477_v21 = vmax.f32 %v1442_v11, %v1446_v19  ;;  %v348_v22 = vpop.f32.mrb[6].mxu0 }
 0x13d   : > { %v455_v23 = vmul.f32 %v1080_v6, %v348_v22  ;;  %v350_v24 = vpop.f32.mrb[7].mxu0 }
 0x13e   : > { %v1450_v25 = vmul.f32 %v1082_v7, %v350_v24 }
 0x13f   : > { %v464_v26 = vmax.f32 %v451_v13, %v455_v23 }
 0x140   : > { %v478_v27 = vmax.f32 %v1444_v15, %v1450_v25  ;;  %v354_v28 = vpop.f32.mrb[8].mxu0 }
 0x141   : > { %v457_v29 = vmul.f32 %v1080_v6, %v354_v28  ;;  %v356_v30 = vpop.f32.mrb[9].mxu0 }
 0x142   : > { %v1454_v31 = vmul.f32 %v1082_v7, %v356_v30 }
 0x143   : > { %v465_v32 = vmax.f32 %v463_v20, %v457_v29 }
 0x144   : > { %v479_v33 = vmax.f32 %v477_v21, %v1454_v31  ;;  %v360_v34 = vpop.f32.mrb[10].mxu0 }
 0x145   : > { %v459_v35 = vmul.f32 %v1080_v6, %v360_v34  ;;  %v362_v36 = vpop.f32.mrb[11].mxu0 }
 0x146   : > { %v1457_v37 = vmul.f32 %v1082_v7, %v362_v36 }
 0x147   : > { %v466_v38 = vmax.f32 %v464_v26, %v459_v35 }
 0x148   : > { %v480_v39 = vmax.f32 %v478_v27, %v1457_v37  ;;  %v366_v40 = vpop.f32.mrb[12].mxu0 }
 0x149   : > { %v461_v41 = vmul.f32 %v1080_v6, %v366_v40  ;;  %v368_v42 = vpop.f32.mrb[13].mxu0 }
 0x14a   : > { %v462_v43 = vmul.f32 %v1082_v7, %v368_v42 }
 0x14b   : > { %v468_v44 = vsel %vm467_vm0, %v461_v41, -inf }
 0x14c   : > { %v469_v45 = vmax.f32 %v465_v32, %v468_v44  ;;  %v481_v46 = vsel %vm467_vm0, %v462_v43, -inf }
 0x14d   : > { %v482_v47 = vmax.f32 %v479_v33, %v481_v46 }
 0x14e   : > { %v470_v48 = vmax.f32 %v469_v45, %v466_v38 }
 0x14f   : > { %v483_v49 = vmax.f32 %v482_v47, %v480_v39 }
 0x150   : > { %v471_v50 = vrot.slane %v470_v48, 4 }
 0x151   : > { %v484_v51 = vrot.slane %v483_v49, 4 }
 0x152   : > { %v472_v52 = vmax.f32 %v470_v48, %v471_v50 }
 0x153   : > { %v485_v53 = vmax.f32 %v483_v49, %v484_v51 }
 0x154   : > { %v473_v54 = vrot.slane %v472_v52, 2 }
 0x155   : > { %v486_v55 = vrot.slane %v485_v53, 2 }
 0x156   : > { %v474_v56 = vmax.f32 %v472_v52, %v473_v54 }
 0x157   : > { %v487_v57 = vmax.f32 %v485_v53, %v486_v55 }
 0x158   : > { %v475_v58 = vrot.slane %v474_v56, 1 }
 0x159   : > { %v488_v59 = vrot.slane %v487_v57, 1 }
 0x15a   : > { %v476_v60 = vmax.f32 %v474_v56, %v475_v58 }
 0x15b   : > { %v489_v61 = vmax.f32 %v487_v57, %v488_v59 }
 0x15c   : > { %v490_v62 = vsub.f32 %v449_v9, %v476_v60  ;;  %v492_v63 = vsub.f32 %v451_v13, %v476_v60  ;;  %v494_v1 = vsub.f32 %v453_v17, %v476_v60  ;;  %v496_v2 = vsub.f32 %v455_v23, %v476_v60 }
 0x15d   : > { %v498_v3 = vsub.f32 %v457_v29, %v476_v60  ;;  %v500_v4 = vsub.f32 %v459_v35, %v476_v60  ;;  %v502_v5 = vsub.f32 %v461_v41, %v476_v60  ;;  %v491_v6 = vsub.f32 %v1442_v11, %v489_v61 }
 0x15e   : > { %v504_v7 = vmul.f32 1.442695, %v490_v62  ;;  %v508_v8 = vmul.f32 1.442695, %v492_v63  ;;  %v493_v10 = vsub.f32 %v1444_v15, %v489_v61  ;;  %v512_v12 = vmul.f32 1.442695, %v494_v1 }
 0x15f   : > { %v495_v14 = vsub.f32 %v1446_v19, %v489_v61  ;;  %v516_v16 = vmul.f32 1.442695, %v496_v2  ;;  %v497_v18 = vsub.f32 %v1450_v25, %v489_v61  ;;  %v499_v9 = vsub.f32 %v1454_v31, %v489_v61 }
 0x160   : > { %1083 = vpow2.f32 %v504_v7  ;;  %v520_v13 = vmul.f32 1.442695, %v498_v3  ;;  %v501_v17 = vsub.f32 %v1457_v37, %v489_v61  ;;  %v503_v20 = vsub.f32 %v462_v43, %v489_v61 }
 0x161   : > { %1085 = vpow2.f32 %v508_v8  ;;  %v528_v21 = vmul.f32 1.442695, %v502_v5  ;;  %v506_v11 = vmul.f32 1.442695, %v491_v6  ;;  %v510_v22 = vmul.f32 1.442695, %v493_v10 }
 0x162   : > { %1087 = vpow2.f32 %v512_v12  ;;  %v524_v15 = vmul.f32 1.442695, %v500_v4  ;;  %v514_v19 = vmul.f32 1.442695, %v495_v14  ;;  %v518_v23 = vmul.f32 1.442695, %v497_v18 }
 0x163   : > { %1089 = vpow2.f32 %v516_v16  ;;  %v522_v25 = vmul.f32 1.442695, %v499_v9  ;;  %v530_v27 = vmul.f32 1.442695, %v503_v20  ;;  %v526_v29 = vmul.f32 1.442695, %v501_v17 }
 0x164   : > { %1091 = vpow2.f32 %v520_v13 }
 0x165   : > { %1093 = vpow2.f32 %v528_v21 }
 0x166   : > { %1095 = vpow2.f32 %v506_v11 }
 0x167   : > { %1097 = vpow2.f32 %v510_v22 }
 0x168   : > { %1099 = vpow2.f32 %v524_v15 }
 0x169   : > { %1101 = vpow2.f32 %v514_v19 }
 0x16a   : > { %v1084_v24 = vpop.eup %1083  ;;  %1103 = vpow2.f32 %v518_v23 }
 0x16b   : > { %v1086_v26 = vpop.eup %1085  ;;  %1105 = vpow2.f32 %v522_v25 }
 0x16c   : > { %v532_v28 = vadd.f32 %v1086_v26, %v1084_v24  ;;  %v1088_v30 = vpop.eup %1087  ;;  %1107 = vpow2.f32 %v530_v27  ;;  %v248_v27 = vld [vmem:[%s1645_s1] sm:$0xff] }
 0x16d   : > { %v1090_v31 = vpop.eup %1089  ;;  %1109 = vpow2.f32 %v526_v29  ;;  %v249_v29 = vld [vmem:[%s1645_s1 + $0x8] sm:$0xff] }
 0x16e   : > { %v533_v32 = vadd.f32 %v1088_v30, %v532_v28  ;;  %v1092_v33 = vpop.eup %1091  ;;  %v251_v28 = vld [vmem:[%s1645_s1 + $0x18] sm:$0xff] }
 0x16f   : > { %v1094_v34 = vpop.eup %1093 }
 0x170   : > { %v534_v35 = vadd.f32 %v1090_v31, %v533_v32  ;;  %v1096_v36 = vpop.eup %1095  ;;  %v537_v43 = vsel %vm467_vm0, %v1094_v34, 0.0  ;;  %v254_v32 = vld [vmem:[%s1645_s1 + $0x30] sm:$0xff] }
 0x171   : > { %v1098_v37 = vpop.eup %1097 }
 0x172   : > { %v535_v38 = vadd.f32 %v1092_v33, %v534_v35  ;;  %v1100_v39 = vpop.eup %1099  ;;  %v545_v40 = vadd.f32 %v1098_v37, %v1096_v36  ;;  %v257_v35 = vld [vmem:[%s1645_s1 + $0x48] sm:$0xff] }
 0x173   : > { %v1102_v41 = vpop.eup %1101 }
 0x174   : > { %v536_v42 = vadd.f32 %v1100_v39, %v535_v38  ;;  %v546_v44 = vadd.f32 %v1102_v41, %v545_v40  ;;  %v1104_v45 = vpop.eup %1103  ;;  %v260_v38 = vld [vmem:[%s1645_s1 + $0x60] sm:$0xff]  ;;  %v262_v40 = vld [vmem:[%s1645_s1 + $0x70] sm:$0xff] }
 0x175   : > { %v1106_v48 = vpop.eup %1105 }
 0x176   : > { %v538_v46 = vadd.f32 %v537_v43, %v536_v42  ;;  %v547_v47 = vadd.f32 %v1104_v45, %v546_v44  ;;  %v1108_v50 = vpop.eup %1107 }
 0x177   : > { %v1110_v52 = vpop.eup %1109  ;;  %v550_v56 = vsel %vm467_vm0, %v1108_v50, 0.0 }
 0x178   : > { %v539_v49 = vrot.slane %v538_v46, 4  ;;  %v548_v51 = vadd.f32 %v1106_v48, %v547_v47 }
 0x17a   : > { %v540_v53 = vadd.f32 %v539_v49, %v538_v46  ;;  %v549_v54 = vadd.f32 %v1110_v52, %v548_v51 }
 0x17c   : > { %v541_v55 = vrot.slane %v540_v53, 2  ;;  %v551_v57 = vadd.f32 %v550_v56, %v549_v54 }
 0x17e   : > { %v542_v58 = vadd.f32 %v541_v55, %v540_v53  ;;  %v552_v59 = vrot.slane %v551_v57, 4 }
 0x180   : > { %v543_v60 = vrot.slane %v542_v58, 1  ;;  %v553_v61 = vadd.f32 %v552_v59, %v551_v57 }
 0x182   : > { %v544_v62 = vadd.f32 %v543_v60, %v542_v58  ;;  %v554_v63 = vrot.slane %v553_v61, 2 }
 0x184   : > { %1111 = vrcp.f32 %v544_v62  ;;  %v555_v1 = vadd.f32 %v554_v63, %v553_v61 }
 0x186   : > { %v556_v2 = vrot.slane %v555_v1, 1 }
 0x188   : > { %v557_v3 = vadd.f32 %v556_v2, %v555_v1 }
 0x18a   : > { %1113 = vrcp.f32 %v557_v3 }
 0x18e   : > { %v1112_v4 = vpop.eup %1111 }
 0x18f   : > { %v560_v5 = vmul.f32 %v1112_v4, %v1084_v24  ;;  %v562_v6 = vmul.f32 %v1112_v4, %v1086_v26  ;;  %v564_v7 = vmul.f32 %v1112_v4, %v1088_v30  ;;  %v566_v8 = vmul.f32 %v1112_v4, %v1090_v31  ;;  %v250_v26 = vld [vmem:[%s1645_s1 + $0x10] sm:$0xff]  ;;  %v252_v30 = vld [vmem:[%s1645_s1 + $0x20] sm:$0xff]  ;;  %v253_v31 = vld [vmem:[%s1645_s1 + $0x28] sm:$0xff] }
 0x190   : > { %v568_v10 = vmul.f32 %v1112_v4, %v1092_v33  ;;  %v570_v12 = vmul.f32 %v1112_v4, %v1100_v39  ;;  %v572_v14 = vmul.f32 %v1112_v4, %v1094_v34  ;;  %v255_v33 = vld [vmem:[%s1645_s1 + $0x38] sm:$0xff]  ;;  %v256_v34 = vld [vmem:[%s1645_s1 + $0x40] sm:$0xff]  ;;  %v261_v39 = vld [vmem:[%s1645_s1 + $0x68] sm:$0xff] }
 0x191   : > { %v994_v16 = vpack.c.bf16 %v562_v6, %v560_v5  ;;  %v998_v18 = vpack.c.bf16 %v566_v8, %v564_v7 }
 0x192   : > { %v1002_v9 = vpack.c.bf16 %v570_v12, %v568_v10 }
 0x194   : > { %v1114_v13 = vpop.eup %1113 }
 0x195   : > { %v561_v17 = vmul.f32 %v1114_v13, %v1096_v36  ;;  %v563_v20 = vmul.f32 %v1114_v13, %v1098_v37  ;;  %v565_v21 = vmul.f32 %v1114_v13, %v1102_v41  ;;  %v567_v11 = vmul.f32 %v1114_v13, %v1104_v45  ;;  %v258_v36 = vld [vmem:[%s1645_s1 + $0x50] sm:$0xff]  ;;  %v259_v37 = vld [vmem:[%s1645_s1 + $0x58] sm:$0xff] }
 0x196   : > { %v569_v22 = vmul.f32 %v1114_v13, %v1106_v48  ;;  %v571_v15 = vmul.f32 %v1114_v13, %v1110_v52  ;;  %v573_v19 = vmul.f32 %v1114_v13, %v1108_v50  ;;  %v263_v41 = vld [vmem:[%s1645_s1 + $0x78] sm:$0xff] }
 0x197   : > { %v992_v23 = vpack.c.bf16 %v563_v20, %v561_v17  ;;  %v996_v25 = vpack.c.bf16 %v567_v11, %v565_v21 }
 0x198   : > { %v1000_v24 = vpack.c.bf16 %v571_v15, %v569_v22 }
 0x199   : > { %993 = vmatprep.subr.bf16.mxu0 %v992_v23  ;;  %1004 = vmatprep.subr.bf16.mxu1 %v992_v23 }
 0x19a   : > { %995 = vmatpush1.bf16.msra.mxu0 %v994_v16  ;;  %1008 = vmatpush1.bf16.msra.mxu1 %v994_v16 }
 0x19b   : > { %997 = vmatprep.subr.bf16.mxu0 %v996_v25  ;;  %1005 = vmatprep.subr.bf16.mxu1 %v996_v25 }
 0x19e   : > { %999 = vmatpush1.bf16.msra.mxu0 %v998_v18  ;;  %1009 = vmatpush1.bf16.msra.mxu1 %v998_v18 }
 0x19f   : > { %1001 = vmatprep.subr.bf16.mxu0 %v1000_v24  ;;  %1006 = vmatprep.subr.bf16.mxu1 %v1000_v24 }
 0x1a2   : > { %1003 = vmatpush1.bf16.msra.mxu0 %v1002_v9  ;;  %1010 = vmatpush1.bf16.msra.mxu1 %v1002_v9 }
 0x1a3   : > { %935 = vmatprep.subr.msk.mxu0 %vm467_vm0, %v573_v19  ;;  %1007 = vmatprep.subr.msk.mxu1 %vm467_vm0, %v573_v19 }
 0x1a6   : > { %936 = vmatpush1.msk.msra.mxu0 %vm467_vm0, %v572_v14  ;;  %1011 = vmatpush1.msk.msra.mxu1 %vm467_vm0, %v572_v14 }
 0x1a7   : > { %939 = vmatmul.mubr.msk.f32.vlgmr.msra.gmra.mrb[0].mxu1 %vm574_vm1, %v250_v26  ;;  %937 = vmatmul.mubr.msk.f32.vlgmr.msra.gmra.mrb[14].mxu0 %vm574_vm1, %v248_v27 }
 0x1a8   : > { %711 = vmatprep.mubr.f32.mxu1 %v1232_v0  ;;  %699 = vmatprep.mubr.f32.mxu0 %v1232_v0 }
 0x1ab   : > { %940 = vmatmul.mubr.msk.f32.gmra.mrb[2].mxu1 %vm574_vm1, %v251_v28  ;;  %938 = vmatmul.mubr.msk.f32.gmra.mrb[16].mxu0 %vm574_vm1, %v249_v29 }
 0x1ac   : > { %717 = vmatprep.mubr.f32.mxu1 %v1232_v0 }
 0x1af   : > { %941 = vmatmul.mubr.msk.f32.gmra.mrb[4].mxu1 %vm574_vm1, %v252_v30 }
 0x1b0   : > { %723 = vmatprep.mubr.f32.mxu1 %v1232_v0 }
 0x1b3   : > { %942 = vmatmul.mubr.msk.f32.gmra.mrb[6].mxu1 %vm574_vm1, %v253_v31 }
 0x1b4   : > { %729 = vmatprep.mubr.f32.mxu1 %v1232_v0 }
 0x1b7   : > { %943 = vmatmul.mubr.msk.f32.gmra.mrb[8].mxu1 %vm574_vm1, %v254_v32 }
 0x1b8   : > { %735 = vmatprep.mubr.f32.mxu1 %v1232_v0 }
 0x1bb   : > { %944 = vmatmul.mubr.msk.f32.gmra.mrb[10].mxu1 %vm574_vm1, %v255_v33 }
 0x1bc   : > { %741 = vmatprep.mubr.f32.mxu1 %v1232_v0 }
 0x1bf   : > { %945 = vmatmul.mubr.msk.f32.gmra.mrb[12].mxu1 %vm574_vm1, %v256_v34 }
 0x1c0   : > { %747 = vmatprep.mubr.f32.mxu1 %v1232_v0 }
 0x1c3   : > { %946 = vmatmul.mubr.msk.f32.gmra.mrb[14].mxu1 %vm574_vm1, %v257_v35 }
 0x1c4   : > { %753 = vmatprep.mubr.f32.mxu1 %v1232_v0 }
 0x1c7   : > { %947 = vmatmul.mubr.msk.f32.gmra.mrb[16].mxu1 %vm574_vm1, %v258_v36 }
 0x1c8   : > { %759 = vmatprep.mubr.f32.mxu1 %v1232_v0 }
 0x1cb   : > { %948 = vmatmul.mubr.msk.f32.gmra.mrb[18].mxu1 %vm574_vm1, %v259_v37 }
 0x1cc   : > { %765 = vmatprep.mubr.f32.mxu1 %v1232_v0 }
 0x1cf   : > { %949 = vmatmul.mubr.msk.f32.gmra.mrb[20].mxu1 %vm574_vm1, %v260_v38 }
 0x1d0   : > { %771 = vmatprep.mubr.f32.mxu1 %v1232_v0 }
 0x1d3   : > { %950 = vmatmul.mubr.msk.f32.gmra.mrb[22].mxu1 %vm574_vm1, %v261_v39 }
 0x1d4   : > { %777 = vmatprep.mubr.f32.mxu1 %v1232_v0 }
 0x1d7   : > { %951 = vmatmul.mubr.msk.f32.gmra.mrb[24].mxu1 %vm574_vm1, %v262_v40 }
 0x1d8   : > { %783 = vmatprep.mubr.f32.mxu1 %v1232_v0 }
 0x1db   : > { %952 = vmatmul.mubr.msk.f32.gmra.mrb[26].mxu1 %vm574_vm1, %v263_v41 }
 0x27a   : > { %v707_v42 = vpop.f32.mrb[0].mxu1  ;;  %v695_v43 = vpop.f32.mrb[14].mxu0 }
 0x27b   : > { %794 = vst [vmem:[%s1554_s6 + $0x20] sm:$0xff] %v707_v42  ;;  %v709_v0 = vpop.f32.mrb[1].mxu1  ;;  %790 = vst [vmem:[%s1554_s6] sm:$0xff] %v695_v43  ;;  %v697_v44 = vpop.f32.mrb[15].mxu0 }
 0x27c   : > { %795 = vst [vmem:[%s1554_s6 + $0x28] sm:$0xff] %v709_v0  ;;  %791 = vst [vmem:[%s1554_s6 + $0x8] sm:$0xff] %v697_v44 }
 0x27e   : > { %v713_v45 = vpop.f32.mrb[2].mxu1  ;;  %v701_v46 = vpop.f32.mrb[16].mxu0 }
 0x27f   : > { %796 = vst [vmem:[%s1554_s6 + $0x30] sm:$0xff] %v713_v45  ;;  %v715_v47 = vpop.f32.mrb[3].mxu1  ;;  %792 = vst [vmem:[%s1554_s6 + $0x10] sm:$0xff] %v701_v46  ;;  %v703_v48 = vpop.f32.mrb[17].mxu0 }
 0x280   : > { %797 = vst [vmem:[%s1554_s6 + $0x38] sm:$0xff] %v715_v47  ;;  %793 = vst [vmem:[%s1554_s6 + $0x18] sm:$0xff] %v703_v48 }
 0x282   : > { %v719_v49 = vpop.f32.mrb[4].mxu1 }
 0x283   : > { %798 = vst [vmem:[%s1554_s6 + $0x40] sm:$0xff] %v719_v49  ;;  %v721_v50 = vpop.f32.mrb[5].mxu1 }
 0x284   : > { %799 = vst [vmem:[%s1554_s6 + $0x48] sm:$0xff] %v721_v50 }
 0x286   : > { %v725_v51 = vpop.f32.mrb[6].mxu1 }
 0x287   : > { %800 = vst [vmem:[%s1554_s6 + $0x50] sm:$0xff] %v725_v51  ;;  %v727_v52 = vpop.f32.mrb[7].mxu1 }
 0x288   : > { %801 = vst [vmem:[%s1554_s6 + $0x58] sm:$0xff] %v727_v52 }
 0x28a   : > { %v731_v53 = vpop.f32.mrb[8].mxu1 }
 0x28b   : > { %802 = vst [vmem:[%s1554_s6 + $0x60] sm:$0xff] %v731_v53  ;;  %v733_v54 = vpop.f32.mrb[9].mxu1 }
 0x28c   : > { %803 = vst [vmem:[%s1554_s6 + $0x68] sm:$0xff] %v733_v54 }
 0x28e   : > { %v737_v55 = vpop.f32.mrb[10].mxu1 }
 0x28f   : > { %804 = vst [vmem:[%s1554_s6 + $0x70] sm:$0xff] %v737_v55  ;;  %v739_v56 = vpop.f32.mrb[11].mxu1 }
 0x290   : > { %805 = vst [vmem:[%s1554_s6 + $0x78] sm:$0xff] %v739_v56 }
 0x292   : > { %v743_v57 = vpop.f32.mrb[12].mxu1 }
 0x293   : > { %806 = vst [vmem:[%s1554_s6 + $0x80] sm:$0xff] %v743_v57  ;;  %v745_v58 = vpop.f32.mrb[13].mxu1 }
 0x294   : > { %807 = vst [vmem:[%s1554_s6 + $0x88] sm:$0xff] %v745_v58 }
 0x296   : > { %v749_v59 = vpop.f32.mrb[14].mxu1 }
 0x297   : > { %808 = vst [vmem:[%s1554_s6 + $0x90] sm:$0xff] %v749_v59  ;;  %v751_v60 = vpop.f32.mrb[15].mxu1 }
 0x298   : > { %809 = vst [vmem:[%s1554_s6 + $0x98] sm:$0xff] %v751_v60 }
 0x29a   : > { %v755_v61 = vpop.f32.mrb[16].mxu1 }
 0x29b   : > { %810 = vst [vmem:[%s1554_s6 + $0xa0] sm:$0xff] %v755_v61  ;;  %v757_v62 = vpop.f32.mrb[17].mxu1 }
 0x29c   : > { %811 = vst [vmem:[%s1554_s6 + $0xa8] sm:$0xff] %v757_v62 }
 0x29e   : > { %v761_v63 = vpop.f32.mrb[18].mxu1 }
 0x29f   : > { %812 = vst [vmem:[%s1554_s6 + $0xb0] sm:$0xff] %v761_v63  ;;  %v763_v1 = vpop.f32.mrb[19].mxu1 }
 0x2a0   : > { %813 = vst [vmem:[%s1554_s6 + $0xb8] sm:$0xff] %v763_v1 }
 0x2a2   : > { %v767_v2 = vpop.f32.mrb[20].mxu1 }
 0x2a3   : > { %814 = vst [vmem:[%s1554_s6 + $0xc0] sm:$0xff] %v767_v2  ;;  %v769_v3 = vpop.f32.mrb[21].mxu1 }
 0x2a4   : > { %815 = vst [vmem:[%s1554_s6 + $0xc8] sm:$0xff] %v769_v3 }
 0x2a6   : > { %v773_v4 = vpop.f32.mrb[22].mxu1 }
 0x2a7   : > { %816 = vst [vmem:[%s1554_s6 + $0xd0] sm:$0xff] %v773_v4  ;;  %v775_v5 = vpop.f32.mrb[23].mxu1 }
 0x2a8   : > { %817 = vst [vmem:[%s1554_s6 + $0xd8] sm:$0xff] %v775_v5 }
 0x2aa   : > { %v779_v6 = vpop.f32.mrb[24].mxu1 }
 0x2ab   : > { %818 = vst [vmem:[%s1554_s6 + $0xe0] sm:$0xff] %v779_v6  ;;  %v781_v7 = vpop.f32.mrb[25].mxu1 }
 0x2ac   : > { %819 = vst [vmem:[%s1554_s6 + $0xe8] sm:$0xff] %v781_v7 }
 0x2ae   : > { %v785_v8 = vpop.f32.mrb[26].mxu1 }
 0x2af   : > { %820 = vst [vmem:[%s1554_s6 + $0xf0] sm:$0xff] %v785_v8  ;;  %v787_v10 = vpop.f32.mrb[27].mxu1 }
 0x2b0   : > { %821 = vst [vmem:[%s1554_s6 + $0xf8] sm:$0xff] %v787_v10 }
 0x2b1   : > { %1158 = shalt.err (!%p1155_p5)
}
 0x2b2   : > { %s1159_s4 = scalar_lea.hbm %s1591_s22, 4096  ;;  %s1163_s19 = scalar_lea.hbm %s1647_s3, 8192 }
 0x2b3   : > { %p1160_p4 = scmp.ne.s32.totalorder %s1591_s22, %s1159_s4  ;;  %p1164_p12 = scmp.lt.u32.totalorder %s1591_s22, %s1647_s3 }
 0x2b4   : > { %p1165_p1 = scmp.lt.u32.totalorder %s1163_s19, %s1159_s4  ;;  %p1167_p8 = scmp.lt.u32.totalorder %s1159_s4, %s1591_s22 }
 0x2b5   : > { %p1161_p7 = pnand %p1160_p4, %p1655_p9 }
 0x2b6   : > { %p1166_p3 = por %p1165_p1, %p1164_p12 }
 0x2b7   : > { %p1162_p10 = pneg %p1161_p7 }
 0x2b8   : > { %p1168_p11 = por %p1167_p8, %p1166_p3 }
 0x2ba   : > { %p1169_p0 = pnand %p1168_p11, %p1162_p10 }
 0x2bc   : > { %1172 = shalt.err (!%p1169_p0)
}
 0x2bd   : > { %s1234_s6 = smov 256   ;;  %s1235_s18 = smov 16  }
 0x2be   : > { %1014 = dma.vmem_to_hbm [thread:$0]  (%p1655_p9), %s1593_s8, 4096, %s1591_s22, %s823_s23, %s1234_s6, %s1234_s6, %s1235_s18  }
 0x2bf PF: > { %s853_s9 = sand.u32 1, %s1207_s12   ;;  %p1656_p6 = scmp.ne.s32.totalorder %s1652_s27, 0 }
 0x2c0   : > { %p1657_p13 = scmp.ge.s32.totalorder %s1227_s17, 2  ;;  %s854_s10 = scalar_lea.sflag [#allocation4], %s853_s9 }
 0x2c2   : > { %p1021_p2 = pnand %p1657_p13, %p1656_p6 }
 0x2c4   : > { %1202 = dma.done.wait (!%p1021_p2), %s854_s10, 4096  }
 0x2c5   : > { %1204 = vsyncadd (!%p1021_p2), %s854_s10, 4294963200  ;;  %s19_s17 = sadd.s32 1, %s1227_s17   ;;  %s1658_s12 = smov %s1211_s13 }
 0x2c6   : > { %p16_p5 = scmp.ge.s32.totalorder %s19_s17, 4   ;;  %s1659_s13 = smov %s1215_s14 }
 0x2c7   : > { %s1660_s14 = smov %s1312_s26  ;;  %s1661_s15 = smov %s1223_s16 }
 0x2c8   : > { %s1662_s16 = smov %s1664_s20  ;;  %18 = sbr.rel (!%p16_p5) target bundleno = 6 (0x6), region = 77 }
 0x2cf   :  { %859 = vsyncpa [#allocation3], 1 }
 0x2d0   :  { %861 = vsyncpa [#allocation3 + $0x1], 1 }
 0x2d1   :  { %862 = vsyncpa [#allocation4], 1 }
 0x2d2   :  { %864 = vsyncpa [#allocation4 + $0x1], 1 }

</bundles_post_ra>
